<compile_context>
chip_gen: v6e
topology: v6e:2x2x1
jax: 0.10.0
libtpu: 0.0.40
codegen_flags: <defaults>
</compile_context>

<pallas_src>
import functools

import jax
import jax.numpy as jnp
from jax import lax
from jax.experimental import pallas as pl
from jax.experimental.pallas import tpu as pltpu

# Module hyper-parameters (globals in the original model.py).
HIDDEN_SIZE = 64
EMB_SIZE = 32
DROP_RATE = 0.1

# keep iff uniform uint32 >= round(p * 2^32)  ->  P(keep) = 1 - p.
_DROP_THRESHOLD = min(int(round(DROP_RATE * (1 << 32))), (1 << 32) - 1)
_GOLDEN = 0x9E3779B9  # seed mixing constant


def _round_up(n, m):
    return ((n + m - 1) // m) * m


def _encoder_kernel(seed_ref, x_ref, w1_ref, b1_ref, w2_ref, b2_ref, o_ref,
                    *, training: bool):
    """h = GELU(W1 @ x^T + b1); h = dropout(h); o^T = W2 @ h + b2.

    x_ref : [rows, inp]   (natural storage layout, rows = batch tile)
    w1_ref: [hid, inp]    w2_ref: [emb, hid]   (PyTorch nn.Linear layout)
    b1_ref: [hid, 1]      b2_ref: [emb, 1]
    o_ref : [emb, rows]   (batch on the 128-lane axis -> lane-dense stores)
    """
    # Cast x to the weight dtype *inside* the kernel (free on the VPU relative
    # to DMA; avoids an extra wrapper-side HBM pass over x).
    xb = x_ref[...].astype(w1_ref.dtype)

    # fc1 on the MXU: contract the inp dim of both operands -> [hid, rows].
    h = lax.dot_general(w1_ref[...], xb, (((1,), (1,)), ((), ())),
                        preferred_element_type=jnp.float32)
    h = h + b1_ref[...]                       # [hid, 1] broadcast over lanes

    # Exact (erf-based) GELU in f32 — matches torch.nn.GELU() default.
    h = 0.5 * h * (1.0 + lax.erf(h * jnp.float32(0.7071067811865476)))

    if training:
        # Inverted dropout from a counter-based hash (lowbias32).  The counter
        # is the *global* (batch, feature) element index, so the mask does not
        # depend on block_rows / grid and lowers on CPU interpret and Mosaic.
        hid, rows = h.shape
        feat = lax.broadcasted_iota(jnp.int32, h.shape, 0).astype(jnp.uint32)
        col = lax.broadcasted_iota(jnp.int32, h.shape, 1).astype(jnp.uint32)
        gcol = col + (pl.program_id(0) * rows).astype(jnp.uint32)
        idx = gcol * jnp.uint32(hid) + feat
        seed_mix = seed_ref[0].astype(jnp.uint32) * jnp.uint32(_GOLDEN)
        u = idx ^ seed_mix
        u = u ^ (u >> 16)
        u = u * jnp.uint32(0x7FEB352D)
        u = u ^ (u >> 15)
        u = u * jnp.uint32(0x846CA68B)
        u = u ^ (u >> 16)
        keep = u >= jnp.uint32(_DROP_THRESHOLD)
        h = jnp.where(keep, h * jnp.float32(1.0 / (1.0 - DROP_RATE)),
                      jnp.float32(0.0))

    # fc2 on the MXU: [emb, hid] @ [hid, rows] -> [emb, rows].  Keep h in f32
    # (no extra full-tile cast); the tiny weight upcast is negligible.
    o = jnp.dot(w2_ref[...].astype(jnp.float32), h,
                preferred_element_type=jnp.float32) + b2_ref[...]
    o_ref[...] = o.astype(o_ref.dtype)


def encoder_forward(x, params, *, seed=0, training=False, block_rows=4096,
                    compute_dtype=jnp.bfloat16, out_dtype=None):
    """x: [B, inp_size] -> [B, emb_size].

    params: dict with w1 [hid, inp], b1 [hid], w2 [emb, hid], b2 [emb]
    (PyTorch nn.Linear layout; see init_params).
    """
    w1, b1, w2, b2 = params["w1"], params["b1"], params["w2"], params["b2"]
    B, inp = x.shape
    hid = w1.shape[0]
    emb = w2.shape[0]
    if out_dtype is None:
        out_dtype = x.dtype

    # Batch tile (becomes the 128-lane axis inside the kernel).  Single
    # full-extent block for small B; otherwise a multiple of 128 and a
    # cdiv grid with a masked partial last block (no jnp.pad copy).
    if B <= block_rows:
        block_rows = B
    else:
        block_rows = max(128, _round_up(min(block_rows, B), 128))
    grid = pl.cdiv(B, block_rows)

    # Weights/biases are tiny (~16 KiB) — casting them in the wrapper is fine.
    w1c = w1.astype(compute_dtype)
    w2c = w2.astype(compute_dtype)
    b1c = b1.reshape(hid, 1).astype(jnp.float32)
    b2c = b2.reshape(emb, 1).astype(jnp.float32)
    seed_arr = jnp.asarray([seed], dtype=jnp.int32)

    kernel = functools.partial(_encoder_kernel, training=training)

    out_t = pl.pallas_call(
        kernel,
        out_shape=jax.ShapeDtypeStruct((emb, B), out_dtype),
        grid=(grid,),
        in_specs=[
            pl.BlockSpec(memory_space=pltpu.SMEM),                # seed scalar
            pl.BlockSpec((block_rows, inp), lambda i: (i, 0)),    # x row-tile
            pl.BlockSpec((hid, inp), lambda i: (0, 0)),           # W1
            pl.BlockSpec((hid, 1), lambda i: (0, 0)),             # b1
            pl.BlockSpec((emb, hid), lambda i: (0, 0)),           # W2
            pl.BlockSpec((emb, 1), lambda i: (0, 0)),             # b2
        ],
        out_specs=pl.BlockSpec((emb, block_rows), lambda i: (0, i)),
        compiler_params=pltpu.CompilerParams(
            dimension_semantics=("parallel",),
            # block_rows=4096 footprint is ~12 MiB (lane-padded x tile,
            # double-buffered I/O, f32 temporaries); 32 MiB is safe on
            # v5e (16 MiB default limit), v6e and v7x (64 MiB physical).
            vmem_limit_bytes=32 * 1024 * 1024),
    )(seed_arr, x, w1c, b1c, w2c, b2c)

    # Kernel stores lane-dense [emb, B]; present the module's [B, emb] layout.
    return out_t.T


def init_params(key, inp_size, hidden_size=HIDDEN_SIZE, emb_size=EMB_SIZE):
    """Deterministic synthetic init, PyTorch nn.Linear layout ([out, in])."""
    k1, k2, k3, k4 = jax.random.split(key, 4)
    bound1 = 1.0 / (inp_size ** 0.5)
    bound2 = 1.0 / (hidden_size ** 0.5)
    return {
        "w1": jax.random.uniform(k1, (hidden_size, inp_size), jnp.float32,
                                 -bound1, bound1),
        "b1": jax.random.uniform(k2, (hidden_size,), jnp.float32,
                                 -bound1, bound1),
        "w2": jax.random.uniform(k3, (emb_size, hidden_size), jnp.float32,
                                 -bound2, bound2),
        "b2": jax.random.uniform(k4, (emb_size,), jnp.float32,
                                 -bound2, bound2),
    }


def _reference(x, params):
    h = x @ params["w1"].T + params["b1"]
    h = 0.5 * h * (1.0 + lax.erf(h * jnp.float32(0.7071067811865476)))
    return h @ params["w2"].T + params["b2"]


if __name__ == "__main__":
    key = jax.random.PRNGKey(0)
    k_in, k_p, k_odd = jax.random.split(key, 3)

    batch, inp_size = 8, 32
    x = jax.random.normal(k_in, (batch, inp_size), jnp.float32)
    params = init_params(k_p, inp_size)
    ref = _reference(x, params)

    # Eval mode, f32 weights: tight-ish match to the erf-GELU reference
    # (tolerance allows MXU accumulation-order differences).
    out_f32 = jax.block_until_ready(
        encoder_forward(x, params, training=False, compute_dtype=jnp.float32))
    assert out_f32.shape == (batch, EMB_SIZE)
    assert jnp.allclose(out_f32, ref, atol=2e-3, rtol=2e-3), "f32 mismatch"

    # Default fast path: bf16 matmul operands (x cast in-kernel), f32 accum.
    out_bf16 = jax.block_until_ready(encoder_forward(x, params, training=False))
    assert out_bf16.shape == (batch, EMB_SIZE)
    assert jnp.allclose(out_bf16, ref, atol=5e-2, rtol=5e-2), "bf16 mismatch"

    # Multi-block grid with a masked partial last block (no padding copy).
    x_odd = jax.random.normal(k_odd, (300, inp_size), jnp.float32)
    ref_odd = _reference(x_odd, params)
    out_odd = jax.block_until_ready(
        encoder_forward(x_odd, params, block_rows=128,
                        compute_dtype=jnp.float32))
    assert out_odd.shape == (300, EMB_SIZE)
    assert jnp.allclose(out_odd, ref_odd, atol=2e-3, rtol=2e-3), "tail mismatch"

    # Training path (hash-based dropout): finite, correct shape, and actually
    # different from the eval output.
    out_tr = jax.block_until_ready(
        encoder_forward(x, params, seed=123, training=True))
    assert out_tr.shape == (batch, EMB_SIZE)
    assert bool(jnp.all(jnp.isfinite(out_tr)))
    assert not bool(jnp.allclose(out_tr, out_bf16, atol=1e-6)), "dropout no-op"

    print("KERNEL_OK")
</pallas_src>

<mosaic_0001>
module attributes {stable_mosaic.version = 11 : i64} {
  func.func @_encoder_kernel(%arg0: i32, %arg1: memref<1xi32, #tpu.memory_space<smem>>, %arg2: memref<8x32xf32, #tpu.memory_space<vmem>>, %arg3: memref<64x32xf32, #tpu.memory_space<vmem>>, %arg4: memref<64x1xf32, #tpu.memory_space<vmem>>, %arg5: memref<32x64xf32, #tpu.memory_space<vmem>>, %arg6: memref<32x1xf32, #tpu.memory_space<vmem>>, %arg7: memref<32x8xf32, #tpu.memory_space<vmem>>) attributes {dimension_semantics = [#tpu.dimension_semantics<parallel>], iteration_bounds = array<i64: 1>, scalar_prefetch = 0 : i64, scratch_operands = 0 : i64, tpu.core_type = #tpu.core_type<tc>, window_params = [{transform_indices = @transform_0, window_bounds = array<i64: 1>}, {transform_indices = @transform_1, window_bounds = array<i64: 8, 32>}, {pipeline_mode = #tpu.pipeline_mode<synchronous>, transform_indices = @transform_2, window_bounds = array<i64: 64, 32>}, {pipeline_mode = #tpu.pipeline_mode<synchronous>, transform_indices = @transform_3, window_bounds = array<i64: 64, 1>}, {pipeline_mode = #tpu.pipeline_mode<synchronous>, transform_indices = @transform_4, window_bounds = array<i64: 32, 64>}, {pipeline_mode = #tpu.pipeline_mode<synchronous>, transform_indices = @transform_5, window_bounds = array<i64: 32, 1>}, {transform_indices = @transform_6, window_bounds = array<i64: 32, 8>}]} {
    %c0 = arith.constant 0 : index
    %c0_0 = arith.constant 0 : index
    %0 = vector.load %arg2[%c0, %c0_0] : memref<8x32xf32, #tpu.memory_space<vmem>>, vector<8x32xf32>
    %c0_1 = arith.constant 0 : index
    %c0_2 = arith.constant 0 : index
    %1 = vector.load %arg3[%c0_1, %c0_2] : memref<64x32xf32, #tpu.memory_space<vmem>>, vector<64x32xf32>
    %cst = arith.constant dense<0.000000e+00> : vector<64x8xf32>
    %2 = tpu.matmul %1, %0, %cst {dimension_numbers = #tpu.dot_dimension_numbers<[1], [1], [0], [0], [0, 0, 1, 0], [], []>} : vector<64x32xf32>, vector<8x32xf32>, vector<64x8xf32> -> vector<64x8xf32>
    %c0_3 = arith.constant 0 : index
    %c0_4 = arith.constant 0 : index
    %3 = vector.load %arg4[%c0_3, %c0_4] : memref<64x1xf32, #tpu.memory_space<vmem>>, vector<64x1xf32>
    %4 = vector.broadcast %3 : vector<64x1xf32> to vector<64x8xf32>
    %5 = arith.addf %2, %4 : vector<64x8xf32>
    %cst_5 = arith.constant 5.000000e-01 : f32
    %6 = vector.broadcast %cst_5 : f32 to vector<64x8xf32>
    %7 = arith.mulf %6, %5 : vector<64x8xf32>
    %cst_6 = arith.constant 0.707106769 : f32
    %8 = vector.broadcast %cst_6 : f32 to vector<64x8xf32>
    %9 = arith.mulf %5, %8 : vector<64x8xf32>
    %10 = math.erf %9 : vector<64x8xf32>
    %cst_7 = arith.constant 1.000000e+00 : f32
    %11 = vector.broadcast %cst_7 : f32 to vector<64x8xf32>
    %12 = arith.addf %11, %10 : vector<64x8xf32>
    %13 = arith.mulf %7, %12 : vector<64x8xf32>
    %c0_8 = arith.constant 0 : index
    %c0_9 = arith.constant 0 : index
    %14 = vector.load %arg5[%c0_8, %c0_9] : memref<32x64xf32, #tpu.memory_space<vmem>>, vector<32x64xf32>
    %cst_10 = arith.constant dense<0.000000e+00> : vector<32x8xf32>
    %15 = tpu.matmul %14, %13, %cst_10 {dimension_numbers = #tpu.dot_dimension_numbers<[1], [0], [0], [1], [0, 0, 1, 1], [], []>} : vector<32x64xf32>, vector<64x8xf32>, vector<32x8xf32> -> vector<32x8xf32>
    %c0_11 = arith.constant 0 : index
    %c0_12 = arith.constant 0 : index
    %16 = vector.load %arg6[%c0_11, %c0_12] : memref<32x1xf32, #tpu.memory_space<vmem>>, vector<32x1xf32>
    %17 = vector.broadcast %16 : vector<32x1xf32> to vector<32x8xf32>
    %18 = arith.addf %15, %17 : vector<32x8xf32>
    %c0_13 = arith.constant 0 : index
    %c0_14 = arith.constant 0 : index
    %19 = vector.load %arg7[%c0_13, %c0_14] : memref<32x8xf32, #tpu.memory_space<vmem>>, vector<32x8xf32>
    tpu.vector_store %arg7[%c0_13, %c0_14], %18 {strides = array<i32>} : memref<32x8xf32, #tpu.memory_space<vmem>>, vector<32x8xf32>,
    return
  }
  func.func @transform_0(%arg0: i32) -> i32 {
    %c0_i32 = arith.constant 0 : i32
    %c0_i32_0 = arith.constant 0 : i32
    return %c0_i32 : i32
  }
  func.func @transform_1(%arg0: i32) -> (i32, i32) {
    %c0_i32 = arith.constant 0 : i32
    %c0_i32_0 = arith.constant 0 : i32
    return %arg0, %c0_i32 : i32, i32
  }
  func.func @transform_2(%arg0: i32) -> (i32, i32) {
    %c0_i32 = arith.constant 0 : i32
    %c0_i32_0 = arith.constant 0 : i32
    %c0_i32_1 = arith.constant 0 : i32
    return %c0_i32, %c0_i32_0 : i32, i32
  }
  func.func @transform_3(%arg0: i32) -> (i32, i32) {
    %c0_i32 = arith.constant 0 : i32
    %c0_i32_0 = arith.constant 0 : i32
    %c0_i32_1 = arith.constant 0 : i32
    return %c0_i32, %c0_i32_0 : i32, i32
  }
  func.func @transform_4(%arg0: i32) -> (i32, i32) {
    %c0_i32 = arith.constant 0 : i32
    %c0_i32_0 = arith.constant 0 : i32
    %c0_i32_1 = arith.constant 0 : i32
    return %c0_i32, %c0_i32_0 : i32, i32
  }
  func.func @transform_5(%arg0: i32) -> (i32, i32) {
    %c0_i32 = arith.constant 0 : i32
    %c0_i32_0 = arith.constant 0 : i32
    %c0_i32_1 = arith.constant 0 : i32
    return %c0_i32, %c0_i32_0 : i32, i32
  }
  func.func @transform_6(%arg0: i32) -> (i32, i32) {
    %c0_i32 = arith.constant 0 : i32
    %c0_i32_0 = arith.constant 0 : i32
    return %c0_i32, %arg0 : i32, i32
  }
}

</mosaic_0001>

<bundles_post_ra>
// kernel: tpu_custom_call.1
= control target key start
LH: loop header
LB: loop body
LE: loop exit
PB: predicated region body
PF: predicated region fallthrough
CT: control target
= control target key end

     0   :  { %vm81_vm0 = vcmask 261120   ;;  %v478_v2 = vmov 0   ;;  %vm282_vm1 = vcmask 523264   ;;  %vm380_vm2 = vcmask 64512   ;;  %s615_s0 = inlined_call_operand.<no memory space> [shape: s32[1], index: 0, kind: input, shape index: {}]   ;;  %s616_s1 = inlined_call_operand.vmem [shape: f32[8,32], index: 1, kind: input, shape index: {}]   ;;  %s617_s2 = inlined_call_operand.vmem [shape: f32[64,32], index: 2, kind: input, shape index: {}]   ;;  %s618_s3 = inlined_call_operand.vmem [shape: f32[64,1], index: 3, kind: input, shape index: {}]   ;;  %s619_s5 = inlined_call_operand.vmem [shape: f32[32,1], index: 5, kind: input, shape index: {}]   ;;  %s620_s4 = inlined_call_operand.vmem [shape: f32[32,64], index: 4, kind: input, shape index: {}]   ;;  %s621_s6 = inlined_call_operand.vmem [shape: f32[32,8], index: 6, kind: output, shape index: {}]  }
   0x1   :  { %v24_v0 = vld [vmem:[%s616_s1] sm:$0xff]  ;;  %460 = vset.pattern.permute.xlu0 %v478_v2  ;;  %461 = vset.pattern.permute.xlu1 %v478_v2  ;;  %v26_v3 = vld [vmem:[%s617_s2 + $0x8] sm:$0xff]  ;;  %v27_v4 = vld [vmem:[%s617_s2 + $0x10] sm:$0xff] }
   0x2   :  { %v25_v1 = vld [vmem:[%s617_s2] sm:$0xff]  ;;  %423 = vmatprep.subr.msk.mxu0 %vm81_vm0, %v24_v0  ;;  %v40_v5 = vld [vmem:[%s618_s3 + $0x38] sm:$0xff]  ;;  %v38_v6 = vld [vmem:[%s618_s3 + $0x28] sm:$0xff] }
   0x3   :  { %425 = vmatprep.mubr.msk.f32.mxu0 %vm81_vm0, %v25_v1  ;;  %424 = vmatpush3.xpose.msk.msra.mxu0 %vm81_vm0, %v24_v0  ;;  %v39_v7 = vld [vmem:[%s618_s3 + $0x30] sm:$0xff]  ;;  %v37_v8 = vld [vmem:[%s618_s3 + $0x20] sm:$0xff]  ;;  %v28_v9 = vld [vmem:[%s617_s2 + $0x18] sm:$0xff] }
   0x4   :  { %78 = vperm.xlu0 %460, %v40_v5   ;;  %68 = vperm.xlu1 %461, %v38_v6   ;;  %v29_v10 = vld [vmem:[%s617_s2 + $0x20] sm:$0xff]  ;;  %v36_v11 = vld [vmem:[%s618_s3 + $0x18] sm:$0xff]  ;;  %v35_v12 = vld [vmem:[%s618_s3 + $0x10] sm:$0xff] }
   0x5   :  { %v30_v13 = vld [vmem:[%s617_s2 + $0x28] sm:$0xff]  ;;  %v31_v14 = vld [vmem:[%s617_s2 + $0x30] sm:$0xff]  ;;  %v33_v16 = vld [vmem:[%s618_s3] sm:$0xff] }
   0x6   :  { %426 = vmatmul.mubr.msk.f32.vlgmr.msra.gmra.mxu0 %vm81_vm0, %v26_v3  ;;  %v34_v15 = vld [vmem:[%s618_s3 + $0x8] sm:$0xff]  ;;  %v32_v17 = vld [vmem:[%s617_s2 + $0x38] sm:$0xff]  ;;  %v258_v18 = vld [vmem:[%s619_s5] sm:$0xff] }
   0x7   :  { %428 = vmatprep.mubr.msk.f32.mxu0 %vm81_vm0, %v27_v4  ;;  %v259_v19 = vld [vmem:[%s619_s5 + $0x8] sm:$0xff]  ;;  %v260_v20 = vld [vmem:[%s619_s5 + $0x10] sm:$0xff]  ;;  %v261_v21 = vld [vmem:[%s619_s5 + $0x18] sm:$0xff] }
   0x8   :  { %73 = vperm.xlu0 %460, %v39_v7   ;;  %63 = vperm.xlu1 %461, %v37_v8   ;;  %v254_v22 = vld [vmem:[%s620_s4] sm:$0xff] }
   0x9   :  { %453 = vmatprep.mubr.msk.f32.mxu1 %vm282_vm1, %v254_v22 }
   0xa   :  { %429 = vmatmul.mubr.msk.f32.gmra.mxu0 %vm81_vm0, %v28_v9 }
   0xb   :  { %431 = vmatprep.mubr.msk.f32.mxu0 %vm81_vm0, %v29_v10 }
   0xc   :  { %58 = vperm.xlu0 %460, %v36_v11   ;;  %53 = vperm.xlu1 %461, %v35_v12  }
   0xe   :  { %432 = vmatmul.mubr.msk.f32.gmra.mxu0 %vm81_vm0, %v30_v13 }
   0xf   :  { %434 = vmatprep.mubr.msk.f32.mxu0 %vm81_vm0, %v31_v14 }
  0x10   :  { %48 = vperm.xlu0 %460, %v34_v15   ;;  %43 = vperm.xlu1 %461, %v33_v16  }
  0x12   :  { %435 = vmatmul.mubr.msk.f32.gmra.mxu0 %vm81_vm0, %v32_v17 }
  0x14   :  { %264 = vperm.xlu0 %460, %v258_v18   ;;  %269 = vperm.xlu1 %461, %v259_v19  }
  0x18   :  { %274 = vperm.xlu0 %460, %v260_v20   ;;  %279 = vperm.xlu1 %461, %v261_v21  }
  0x7f   :  { %v79_v23 = vpop.permute.xlu0 %78  ;;  %v69_v24 = vpop.permute.xlu1 %68 }
  0x83   :  { %v74_v26 = vpop.permute.xlu0 %73  ;;  %v64_v28 = vpop.permute.xlu1 %63 }
  0x87   :  { %v59_v31 = vpop.permute.xlu0 %58  ;;  %v54_v34 = vpop.permute.xlu1 %53 }
  0x8b   :  { %v49_v41 = vpop.permute.xlu0 %48  ;;  %v44_v47 = vpop.permute.xlu1 %43 }
  0xc6   :  { %v427_v25 = vpop.f32.mrf.mxu0 }
  0xc7   :  { %v181_v48 = vadd.f32 %v427_v25, %v49_v41  ;;  %v257_v25 = vld [vmem:[%s620_s4 + $0x18] sm:$0xff] }
  0xc8   :  { %v175_v27 = vpop.f32.mrf.mxu0 }
  0xc9   :  { %v176_v51 = vadd.f32 %v175_v27, %v44_v47  ;;  %v223_v53 = vmul.f32 0.70710677, %v181_v48  ;;  %v215_v17 = vmul.f32 0.5, %v181_v48  ;;  %v265_v27 = vpop.permute.xlu0 %264 }
  0xca   :  { %v430_v29 = vpop.f32.mrf.mxu0 }
  0xcb   :  { %v191_v39 = vadd.f32 %v430_v29, %v59_v31  ;;  %v222_v54 = vmul.f32 0.70710677, %v176_v51  ;;  %v214_v20 = vmul.f32 0.5, %v176_v51 }
  0xcc   :  { %v185_v30 = vpop.f32.mrf.mxu0 }
  0xcd   :  { %v186_v44 = vadd.f32 %v185_v30, %v54_v34  ;;  %v225_v49 = vmul.f32 0.70710677, %v191_v39  ;;  %v217_v10 = vmul.f32 0.5, %v191_v39 }
  0xce   :  { %v433_v32 = vpop.f32.mrf.mxu0 }
  0xcf   :  { %v201_v33 = vadd.f32 %v433_v32, %v69_v24  ;;  %v224_v52 = vmul.f32 0.70710677, %v186_v44  ;;  %v216_v14 = vmul.f32 0.5, %v186_v44  ;;  %v256_v24 = vld [vmem:[%s620_s4 + $0x10] sm:$0xff] }
  0xd0   :  { %v195_v35 = vpop.f32.mrf.mxu0 }
  0xd1   :  { %v196_v36 = vadd.f32 %v195_v35, %v64_v28  ;;  %v227_v37 = vmul.f32 0.70710677, %v201_v33  ;;  %v219_v2 = vmul.f32 0.5, %v201_v33  ;;  %v275_v35 = vpop.permute.xlu0 %274 }
  0xd2   :  { %v436_v38 = vpop.f32.mrf.mxu0 }
  0xd3   :  { %v211_v40 = vadd.f32 %v436_v38, %v79_v23  ;;  %v226_v42 = vmul.f32 0.70710677, %v196_v36  ;;  %462 = verf.f32 %v227_v37  ;;  %v218_v6 = vmul.f32 0.5, %v196_v36  ;;  %v255_v23 = vld [vmem:[%s620_s4 + $0x8] sm:$0xff] }
  0xd4   :  { %v205_v43 = vpop.f32.mrf.mxu0 }
  0xd5   :  { %v229_v45 = vmul.f32 0.70710677, %v211_v40  ;;  %v206_v46 = vadd.f32 %v205_v43, %v74_v26  ;;  %v221_v58 = vmul.f32 0.5, %v211_v40  ;;  %v270_v26 = vpop.permute.xlu1 %269 }
  0xd7   :  { %464 = verf.f32 %v229_v45  ;;  %v228_v50 = vmul.f32 0.70710677, %v206_v46  ;;  %v220_v61 = vmul.f32 0.5, %v206_v46 }
  0xd8   :  { %466 = verf.f32 %v226_v42 }
  0xd9   :  { %468 = verf.f32 %v228_v50  ;;  %v280_v32 = vpop.permute.xlu1 %279 }
  0xda   :  { %470 = verf.f32 %v225_v49 }
  0xdb   :  { %472 = verf.f32 %v224_v52 }
  0xdc   :  { %474 = verf.f32 %v223_v53 }
  0xdd   :  { %476 = verf.f32 %v222_v54 }
  0xe0   :  { %v463_v55 = vpop.eup %462 }
  0xe1   :  { %v243_v0 = vadd.f32 1.0, %v463_v55 }
  0xe3   :  { %v251_v7 = vmul.f32 %v243_v0, %v219_v2 }
  0xe4   :  { %v465_v56 = vpop.eup %464 }
  0xe5   :  { %v467_v57 = vpop.eup %466  ;;  %v245_v59 = vadd.f32 1.0, %v465_v56 }
  0xe6   :  { %v469_v60 = vpop.eup %468  ;;  %v242_v4 = vadd.f32 1.0, %v467_v57 }
  0xe7   :  { %v253_v62 = vmul.f32 %v245_v59, %v221_v58  ;;  %v244_v63 = vadd.f32 1.0, %v469_v60  ;;  %v471_v1 = vpop.eup %470 }
  0xe8   :  { %v473_v5 = vpop.eup %472  ;;  %v241_v8 = vadd.f32 1.0, %v471_v1  ;;  %v250_v11 = vmul.f32 %v242_v4, %v218_v6 }
  0xe9   :  { %437 = vmatprep.subr.mxu1 %v253_v62  ;;  %v252_v3 = vmul.f32 %v244_v63, %v220_v61  ;;  %v475_v9 = vpop.eup %474  ;;  %v240_v12 = vadd.f32 1.0, %v473_v5 }
  0xea   :  { %438 = vmatpush3.msra.mxu1 %v253_v62  ;;  %v477_v13 = vpop.eup %476  ;;  %v249_v15 = vmul.f32 %v241_v8, %v217_v10  ;;  %v239_v16 = vadd.f32 1.0, %v475_v9 }
  0xeb   :  { %439 = vmatprep.subr.mxu1 %v252_v3  ;;  %v248_v18 = vmul.f32 %v240_v12, %v216_v14  ;;  %v238_v19 = vadd.f32 1.0, %v477_v13 }
  0xec   :  { %440 = vmatpush3.msra.mxu1 %v252_v3  ;;  %v247_v21 = vmul.f32 %v239_v16, %v215_v17 }
  0xed   :  { %441 = vmatprep.subr.mxu1 %v251_v7  ;;  %v246_v22 = vmul.f32 %v238_v19, %v214_v20 }
  0xee   :  { %442 = vmatpush3.msra.mxu1 %v251_v7 }
  0xef   :  { %443 = vmatprep.subr.mxu1 %v250_v11 }
  0xf0   :  { %444 = vmatpush3.msra.mxu1 %v250_v11 }
  0xf1   :  { %445 = vmatprep.subr.mxu1 %v249_v15 }
  0xf2   :  { %446 = vmatpush3.msra.mxu1 %v249_v15 }
  0xf3   :  { %447 = vmatprep.subr.mxu1 %v248_v18 }
  0xf4   :  { %448 = vmatpush3.msra.mxu1 %v248_v18 }
  0xf5   :  { %449 = vmatprep.subr.mxu1 %v247_v21 }
  0xf6   :  { %450 = vmatpush3.msra.mxu1 %v247_v21 }
  0xf7   :  { %451 = vmatprep.subr.mxu1 %v246_v22 }
  0xf8   :  { %452 = vmatpush3.msra.mxu1 %v246_v22 }
  0xf9   :  { %454 = vmatmul.mubr.msk.f32.vlgmr.msra.gmra.mxu1 %vm282_vm1, %v255_v23 }
  0xfa   :  { %456 = vmatprep.mubr.msk.f32.mxu1 %vm282_vm1, %v256_v24 }
  0xfd   :  { %457 = vmatmul.mubr.msk.f32.gmra.mxu1 %vm282_vm1, %v257_v25 }
 0x1b9   :  { %v455_v28 = vpop.f32.mrf.mxu1 }
 0x1ba   :  { %v367_v29 = vadd.f32 %v455_v28, %v270_v26 }
 0x1bb   :  { %v361_v30 = vpop.f32.mrf.mxu1 }
 0x1bc   :  { %382 = vst.msk [vmem:[%s621_s6 + $0x8] sm:$0xff] %vm380_vm2, %v367_v29  ;;  %v362_v31 = vadd.f32 %v361_v30, %v265_v27 }
 0x1bd   :  { %v458_v33 = vpop.f32.mrf.mxu1 }
 0x1be   :  { %381 = vst.msk [vmem:[%s621_s6] sm:$0xff] %vm380_vm2, %v362_v31  ;;  %v377_v34 = vadd.f32 %v458_v33, %v280_v32 }
 0x1bf   :  { %v371_v36 = vpop.f32.mrf.mxu1 }
 0x1c0   :  { %384 = vst.msk [vmem:[%s621_s6 + $0x18] sm:$0xff] %vm380_vm2, %v377_v34  ;;  %v372_v37 = vadd.f32 %v371_v36, %v275_v35 }
 0x1c2   :  { %383 = vst.msk [vmem:[%s621_s6 + $0x10] sm:$0xff] %vm380_vm2, %v372_v37 }

</bundles_post_ra>
